<compile_context>
chip_gen: v5e
topology: v5e:2x2
jax: 0.10.0
libtpu: 0.0.40
codegen_flags: <defaults>
</compile_context>

<pallas_src>
import jax
import jax.numpy as jnp
from jax.experimental import pallas as pl
from jax.experimental.pallas import tpu as pltpu


def _round_up(x, m):
    return ((x + m - 1) // m) * m


def _patch_embed_kernel(patches_ref, w_ref, b_ref, out_ref):
    # patches_ref: (TM, Kp) bf16 (streamed), w_ref: (Kp, Ep) bf16 (resident),
    # b_ref: (1, Ep) f32 (resident), out_ref: (TM, Ep)
    acc = jnp.dot(patches_ref[...], w_ref[...],
                  preferred_element_type=jnp.float32)
    out_ref[...] = (acc + b_ref[...]).astype(out_ref.dtype)


def patch_embed_forward(x, weight, bias, *, tubelet_size, patch_size,
                        compute_dtype=jnp.bfloat16, out_dtype=None, tm=None):
    """x: (B, C, T, H, W); weight: (E, C, tub, p, p); bias: (E,) -> (B, N, E)."""
    B, C, T, H, W = x.shape
    E = weight.shape[0]
    tub = int(tubelet_size)
    ph = pw = int(patch_size)
    Tp, Hp, Wp = T // tub, H // ph, W // pw
    N = Tp * Hp * Wp
    K = C * tub * ph * pw
    M = B * N
    out_dtype = x.dtype if out_dtype is None else out_dtype

    # ---- Patch extraction (plain JAX reshape/transpose, done in bf16). -----
    # TODO(synk): fold the patch gather into the kernel (grid over (b, t', h')
    # with an x BlockSpec) to avoid materializing the (M, K) patch matrix in HBM.
    xc = x.astype(compute_dtype)
    xp = xc.reshape(B, C, Tp, tub, Hp, ph, Wp, pw)
    xp = jnp.transpose(xp, (0, 2, 4, 6, 1, 3, 5, 7))  # (B,Tp,Hp,Wp,C,tub,ph,pw)
    patches = xp.reshape(M, K)

    # Weight flattened in the same (c, dt, dh, dw) order, transposed to (K, E).
    w_mat = weight.reshape(E, K).T.astype(compute_dtype)

    # ---- Tile size over M (sublane multiple). -------------------------------
    if tm is None:
        tm = min(512, _round_up(M, 8))   # 512 = 2 x 256 MXU tiles (v6e/v7x)
    tm = max(8, _round_up(int(tm), 8))

    # ---- Pad K / E to lane (128) multiples, M to a tile multiple. -----------
    # Zero padding is exact for the matmul; padded rows/cols are sliced off.
    Kp = _round_up(K, 128)
    Ep = _round_up(E, 128)
    Mp = _round_up(M, tm)
    if Kp != K or Mp != M:
        patches = jnp.pad(patches, ((0, Mp - M), (0, Kp - K)))
    if Kp != K or Ep != E:
        w_mat = jnp.pad(w_mat, ((0, Kp - K), (0, Ep - E)))
    b_mat = jnp.pad(bias.astype(jnp.float32), (0, Ep - E)).reshape(1, Ep)

    grid = (Mp // tm,)

    in_bytes = jnp.dtype(compute_dtype).itemsize
    out_bytes = jnp.dtype(out_dtype).itemsize
    # Double-buffered patch/out streams + (conservatively double-buffered)
    # resident weight + bias + headroom; cap at v7x's 64 MiB physical VMEM.
    vmem_needed = (2 * tm * Kp * in_bytes
                   + 2 * tm * Ep * out_bytes
                   + 2 * Kp * Ep * in_bytes
                   + 2 * Ep * 4
                   + (2 << 20))
    vmem_limit = int(min(max(vmem_needed, 16 << 20), 64 << 20))

    cost = pl.CostEstimate(
        flops=2 * Mp * Kp * Ep,
        transcendentals=0,
        bytes_accessed=int(Mp * Kp * in_bytes + Kp * Ep * in_bytes
                           + Ep * 4 + Mp * Ep * out_bytes),
    )

    out = pl.pallas_call(
        _patch_embed_kernel,
        out_shape=jax.ShapeDtypeStruct((Mp, Ep), out_dtype),
        grid_spec=pltpu.PrefetchScalarGridSpec(
            num_scalar_prefetch=0,
            grid=grid,
            in_specs=[
                pl.BlockSpec((tm, Kp), lambda i: (i, 0)),   # streamed patch rows
                pl.BlockSpec((Kp, Ep), lambda i: (0, 0)),   # resident weight
                pl.BlockSpec((1, Ep), lambda i: (0, 0)),    # resident bias
            ],
            out_specs=pl.BlockSpec((tm, Ep), lambda i: (i, 0)),
        ),
        compiler_params=pltpu.CompilerParams(
            dimension_semantics=("parallel",),  # lets v7x split M over its 2 TCs
            vmem_limit_bytes=vmem_limit,
        ),
        cost_estimate=cost,
    )(patches, w_mat, b_mat)

    if Mp != M or Ep != E:
        out = out[:M, :E]
    return out.reshape(B, N, E)


if __name__ == "__main__":
    # Small, self-consistent config.
    B, C = 2, 4
    img_size, patch = 16, 8
    num_frames, tubelet = 4, 2
    embed_dim = 32

    key = jax.random.PRNGKey(0)
    kx, kw, kb = jax.random.split(key, 3)

    x = jax.random.normal(kx, (B, C, num_frames, img_size, img_size), dtype=jnp.float32)
    weight = jax.random.normal(
        kw, (embed_dim, C, tubelet, patch, patch), dtype=jnp.float32) * 0.02
    bias = jax.random.normal(kb, (embed_dim,), dtype=jnp.float32) * 0.02

    # tm=8 forces a multi-step grid even at these tiny shapes so the streamed,
    # weight-resident path is exercised (grid=(2,), blocks (8, 512) x (512, 128)).
    out = patch_embed_forward(
        x, weight, bias, tubelet_size=tubelet, patch_size=patch, tm=8)
    out = jax.block_until_ready(out)

    # Sanity check against a pure-JAX conv reference (same semantics as Conv3d).
    ref = jax.lax.conv_general_dilated(
        x, weight,
        window_strides=(tubelet, patch, patch),
        padding="VALID",
        dimension_numbers=("NCDHW", "OIDHW", "NCDHW"),
    ) + bias[None, :, None, None, None]
    ref = ref.reshape(B, embed_dim, -1).transpose(0, 2, 1)  # (B, N, E)

    assert out.shape == ref.shape, (out.shape, ref.shape)
    # bf16 input streams vs f32 reference -> loosened tolerance.
    assert jnp.allclose(out.astype(jnp.float32), ref, atol=2e-2, rtol=2e-2)

    print("KERNEL_OK")
</pallas_src>

<mosaic_0001>
module attributes {stable_mosaic.version = 11 : i64} {
  func.func @_patch_embed_kernel(%arg0: i32, %arg1: memref<8x512xbf16, #tpu.memory_space<vmem>>, %arg2: memref<512x128xbf16, #tpu.memory_space<vmem>>, %arg3: memref<1x128xf32, #tpu.memory_space<vmem>>, %arg4: memref<8x128xf32, #tpu.memory_space<vmem>>) attributes {dimension_semantics = [#tpu.dimension_semantics<parallel>], iteration_bounds = array<i64: 2>, scalar_prefetch = 0 : i64, scratch_operands = 0 : i64, tpu.core_type = #tpu.core_type<tc>, window_params = [{transform_indices = @transform_0, window_bounds = array<i64: 8, 512>}, {pipeline_mode = #tpu.pipeline_mode<synchronous>, transform_indices = @transform_1, window_bounds = array<i64: 512, 128>}, {pipeline_mode = #tpu.pipeline_mode<synchronous>, transform_indices = @transform_2, window_bounds = array<i64: 1, 128>}, {transform_indices = @transform_3, window_bounds = array<i64: 8, 128>}]} {
    %c0 = arith.constant 0 : index
    %c0_0 = arith.constant 0 : index
    %0 = vector.load %arg1[%c0, %c0_0] : memref<8x512xbf16, #tpu.memory_space<vmem>>, vector<8x512xbf16>
    %c0_1 = arith.constant 0 : index
    %c0_2 = arith.constant 0 : index
    %1 = vector.load %arg2[%c0_1, %c0_2] : memref<512x128xbf16, #tpu.memory_space<vmem>>, vector<512x128xbf16>
    %cst = arith.constant dense<0.000000e+00> : vector<8x128xf32>
    %2 = tpu.matmul %0, %1, %cst {dimension_numbers = #tpu.dot_dimension_numbers<[1], [0], [0], [1], [0, 0, 1, 1], [], []>} : vector<8x512xbf16>, vector<512x128xbf16>, vector<8x128xf32> -> vector<8x128xf32>
    %c0_3 = arith.constant 0 : index
    %c0_4 = arith.constant 0 : index
    %3 = vector.load %arg3[%c0_3, %c0_4] : memref<1x128xf32, #tpu.memory_space<vmem>>, vector<1x128xf32>
    %4 = vector.broadcast %3 : vector<1x128xf32> to vector<8x128xf32>
    %5 = arith.addf %2, %4 : vector<8x128xf32>
    %c0_5 = arith.constant 0 : index
    %c0_6 = arith.constant 0 : index
    %6 = vector.load %arg4[%c0_5, %c0_6] : memref<8x128xf32, #tpu.memory_space<vmem>>, vector<8x128xf32>
    tpu.vector_store %arg4[%c0_5, %c0_6], %5 {strides = array<i32>} : memref<8x128xf32, #tpu.memory_space<vmem>>, vector<8x128xf32>,
    return
  }
  func.func @transform_0(%arg0: i32) -> (i32, i32) {
    %c0_i32 = arith.constant 0 : i32
    %c0_i32_0 = arith.constant 0 : i32
    return %arg0, %c0_i32 : i32, i32
  }
  func.func @transform_1(%arg0: i32) -> (i32, i32) {
    %c0_i32 = arith.constant 0 : i32
    %c0_i32_0 = arith.constant 0 : i32
    %c0_i32_1 = arith.constant 0 : i32
    return %c0_i32, %c0_i32_0 : i32, i32
  }
  func.func @transform_2(%arg0: i32) -> (i32, i32) {
    %c0_i32 = arith.constant 0 : i32
    %c0_i32_0 = arith.constant 0 : i32
    %c0_i32_1 = arith.constant 0 : i32
    return %c0_i32, %c0_i32_0 : i32, i32
  }
  func.func @transform_3(%arg0: i32) -> (i32, i32) {
    %c0_i32 = arith.constant 0 : i32
    %c0_i32_0 = arith.constant 0 : i32
    return %arg0, %c0_i32 : i32, i32
  }
}

</mosaic_0001>

<bundles_post_ra>
// kernel: tpu_custom_call.1
= control target key start
LH: loop header
LB: loop body
LE: loop exit
PB: predicated region body
PF: predicated region fallthrough
CT: control target
= control target key end

     0   :  { %8 = vsyncpa [#allocation3], 0  ;;  %s1166_s0 = inlined_call_operand.hbm [shape: bf16[16,512], index: 0, kind: input, shape index: {}]   ;;  %s1167_s1 = inlined_call_operand.hbm [shape: bf16[512,128], index: 1, kind: input, shape index: {}]   ;;  %s1168_s2 = inlined_call_operand.vmem [shape: f32[1,128], index: 2, kind: input, shape index: {}]   ;;  %s1169_s3 = inlined_call_operand.hbm [shape: f32[16,128], index: 3, kind: output, shape index: {}]  }
   0x1   :  { %10 = vsyncpa [#allocation3 + $0x1], 0 }
   0x2   :  { %11 = vsyncpa [#allocation6], 0 }
   0x3   :  { %12 = vsyncpa [#allocation4], 0 }
   0x4   :  { %14 = vsyncpa [#allocation4 + $0x1], 0  ;;  %s1022_s12 = smov 0   ;;  %s1024_s13 = smov 0  }
   0x5   :  { %s1026_s14 = smov 0   ;;  %s1028_s15 = smov 0  }
   0x6 LB: > { %s130_s18 = sshll.u32 %s1167_s1, 4  ;;  %s1046_s19 = sadd.s32 4294967295, %s997_s15   ;;  %s997_s15 = sphi %s1028_s15, %s1179_s15   ;;  %s993_s14 = sphi %s1026_s14, %s1178_s14   ;;  %s989_s13 = sphi %s1024_s13, %s1177_s13   ;;  %s985_s12 = sphi %s1022_s12, %s1176_s12   ;;  %s131_s18 = int_to_ptr.hbm [resolvable:$true] %s130_s18 }
   0x7   : > { %p632_p0 = scmp.ge.s32.totalorder %s997_s15, 1  ;;  %p41_p1 = scmp.eq.s32.totalorder %s1046_s19, 0 }
   0x8   : > { %p119_p2 = scmp.lt.s32.totalorder %s997_s15, 3  ;;  %s999_s21 = smov [#allocation5]  }
   0x9   : > { %s132_s22 = sshll.u32 %s999_s21, 4  ;;  %s1000_s23 = smov 64   ;;  %s133_s22 = int_to_ptr.vmem [resolvable:$true] %s132_s22 }
   0xa   : > { %p1051_p3 = pnand %p632_p0, %p119_p2  ;;  %s1001_s24 = smov 4  }
   0xb   : > { %s631_s25 = sadd.s32 4294967294, %s997_s15   ;;  %s1062_s26 = sadd.s32 1, %s997_s15  }
   0xc   : > { %p815_p4 = pneg %p1051_p3  ;;  %s27_s27 = sadd.s32 1, %s993_s14 }
   0xd   : > { %s24_s28 = ssub.s32 %s997_s15, %s1062_s26  ;;  %p34_p7 = scmp.ne.s32.totalorder %s993_s14, %s989_s13 }
   0xe   : > { %p816_p6 = pnand %p815_p4, %p41_p1  ;;  %p25_p8 = scmp.eq.s32.totalorder %s24_s28, 0 }
   0xf   : > { %p35_p9 = scmp.eq.s32.totalorder %s997_s15, 0  ;;  %p40_p10 = scmp.ne.s32.totalorder %s989_s13, %s985_s12 }
  0x10   : > { %818 = dma.hbm_to_vmem [thread:$0]  (!%p816_p6), %s131_s18, 4096, %s133_s22, [#allocation6], %s1000_s23, %s1000_s23, %s1001_s24  }
  0x11   : > { %p106_p11 = scmp.eq.s32.totalorder %s1046_s19, 1  ;;  %p1078_p12 = por %p41_p1, %p40_p10 }
  0x12   : > { %s1074_s29 = scalar_select %p25_p8, %s993_s14, %s27_s27  }
  0x13   : > { %p1082_p13 = por %p106_p11, %p34_p7  ;;  %p112_p0 = scmp.eq.s32.totalorder %s631_s25, 1 }
  0x14   : > { %p36_p2 = por %p35_p9, %p34_p7  ;;  %s149_s5 = sand.u32 1, %s993_s14  }
  0x15   : > { %p1087_p4 = por %p112_p0, %p40_p10  ;;  %p828_p6 = scmp.lt.s32.totalorder %s997_s15, 2 }
  0x16   : > { %s635_s7 = sshll.u32 %s149_s5, 4  ;;  %s774_s8 = sshll.u32 %s997_s15, 4 }
  0x17   : > { %s158_s11 = scalar_lea.hbm %s1166_s0, %s774_s8  ;;  %s153_s17 = scalar_lea.vmem [#allocation2], %s635_s7 }
  0x18   : > { %s160_s16 = sshll.u32 %s158_s11, 4  ;;  %s162_s18 = sshll.u32 %s153_s17, 4  ;;  %s161_s16 = int_to_ptr.hbm [resolvable:$true] %s160_s16  ;;  %s163_s18 = int_to_ptr.vmem [resolvable:$true] %s162_s18 }
  0x19   : > { %p1096_p8 = pnand %p828_p6, %p36_p2  ;;  %s150_s22 = scalar_lea.sflag [#allocation3], %s149_s5 }
  0x1a   : > { %s897_s23 = sshra.s32 %s161_s16, 4  ;;  %s904_s28 = scalar_lea.hbm %s1166_s0, 32  ;;  %s898_s23 = int_to_ptr.hbm [resolvable:$true] %s897_s23 }
  0x1b   : > { %s899_s24 = scalar_lea.hbm %s898_s23, 16  ;;  %p901_p9 = pneg %p1096_p8 }
  0x1c   : > { %p900_p7 = scmp.ne.s32.totalorder %s898_s23, %s899_s24  ;;  %p905_p0 = scmp.lt.s32.totalorder %s898_s23, %s1166_s0 }
  0x1d   : > { %p906_p2 = scmp.lt.s32.totalorder %s904_s28, %s899_s24 }
  0x1e   : > { %p902_p10 = pnand %p901_p9, %p900_p7 }
  0x1f   : > { %p907_p6 = por %p906_p2, %p905_p0 }
  0x20   : > { %p903_p11 = pneg %p902_p10 }
  0x22   : > { %p908_p5 = pnand %p907_p6, %p903_p11 }
  0x24   : > { %911 = shalt.err (!%p908_p5)
}
  0x25   : > { %822 = dma.hbm_to_vmem [thread:$0]  (!%p1096_p8), %s161_s16, 256, %s163_s18, %s150_s22  }
  0x26   : > { %171 = sbr.rel (%p1051_p3) target bundleno = 221 (0xdd), region = 32  ;;  %s1113_s5 = sand.u32 (!%p1051_p3), 1, %s989_s13  }
  0x27   : > { %s639_s9 = sshll.u32 (!%p1051_p3), %s1113_s5, 4  ;;  %s174_s10 = scalar_lea.sflag (!%p1051_p3), [#allocation3], %s1113_s5 }
  0x28   : > { %s1117_s11 = scalar_lea.vmem (!%p1051_p3), [#allocation2], %s639_s9 }
  0x2b   : > { %972 = dma.done.wait (%p1078_p12), %s174_s10, 256  }
  0x2c   : > { %974 = vsyncadd (%p1078_p12), %s174_s10, 4294967040 }
  0x2d   : > { %976 = dma.done.wait (%p41_p1), [#allocation6], 4096  }
  0x2e   : > { %978 = vsyncadd (%p41_p1), [#allocation6], 4294963200  ;;  %v782_v0 = vld [vmem:[#allocation5 + $0x38] sm:$0xff]  ;;  %v781_v4 = vld [vmem:[#allocation5 + $0x30] sm:$0xff]  ;;  %s641_s16 = sshll.u32 %s1113_s5, 3  ;;  %s771_s17 = sshll.u32 %s1046_s19, 3 }
  0x2f   : > { %v790_v1 = vld [vmem:[#allocation5 + $0x78] sm:$0xff]  ;;  %482 = vmatpush.bf16.msra.mxu0 %v782_v0  ;;  %v789_v5 = vld [vmem:[#allocation5 + $0x70] sm:$0xff]  ;;  %v780_v8 = vld [vmem:[#allocation5 + $0x28] sm:$0xff]  ;;  %s546_s22 = scalar_lea.hbm %s1169_s3, %s771_s17  ;;  %s205_s23 = scalar_lea.vmem [#allocation7], %s641_s16 }
  0x30   : > { %v798_v2 = vld [vmem:[#allocation5 + $0xb8] sm:$0xff]  ;;  %495 = vmatpush.bf16.msra.mxu1 %v790_v1  ;;  %v797_v6 = vld [vmem:[#allocation5 + $0xb0] sm:$0xff]  ;;  %v788_v9 = vld [vmem:[#allocation5 + $0x68] sm:$0xff]  ;;  %s548_s24 = sshll.u32 %s205_s23, 4  ;;  %s550_s25 = sshll.u32 %s546_s22, 4  ;;  %s549_s24 = int_to_ptr.vmem [resolvable:$true] %s548_s24  ;;  %s551_s25 = int_to_ptr.hbm [resolvable:$true] %s550_s25 }
  0x31   : > { %v806_v3 = vld [vmem:[#allocation5 + $0xf8] sm:$0xff]  ;;  %508 = vmatpush.bf16.msra.mxu2 %v798_v2  ;;  %v805_v7 = vld [vmem:[#allocation5 + $0xf0] sm:$0xff]  ;;  %v796_v10 = vld [vmem:[#allocation5 + $0xa8] sm:$0xff]  ;;  %s536_s27 = scalar_lea.sflag [#allocation4], %s1113_s5  ;;  %s941_s19 = sshra.s32 %s551_s25, 4  ;;  %s942_s19 = int_to_ptr.hbm [resolvable:$true] %s941_s19 }
  0x32   : > { %521 = vmatpush.bf16.msra.mxu3 %v806_v3  ;;  %v804_v11 = vld [vmem:[#allocation5 + $0xe8] sm:$0xff]  ;;  %v779_v12 = vld [vmem:[#allocation5 + $0x20] sm:$0xff]  ;;  %v778_v16 = vld [vmem:[#allocation5 + $0x18] sm:$0xff]  ;;  %s943_s28 = scalar_lea.hbm %s942_s19, 8  ;;  %s947_s9 = scalar_lea.hbm %s1169_s3, 16 }
  0x33   : > { %483 = vmatpush.bf16.msra.mxu0 %v781_v4  ;;  %v787_v13 = vld [vmem:[#allocation5 + $0x60] sm:$0xff]  ;;  %v786_v17 = vld [vmem:[#allocation5 + $0x58] sm:$0xff]  ;;  %v777_v20 = vld [vmem:[#allocation5 + $0x10] sm:$0xff]  ;;  %p944_p1 = scmp.ne.s32.totalorder %s942_s19, %s943_s28  ;;  %p948_p12 = scmp.lt.s32.totalorder %s942_s19, %s1169_s3 }
  0x34   : > { %496 = vmatpush.bf16.msra.mxu1 %v789_v5  ;;  %v795_v14 = vld [vmem:[#allocation5 + $0xa0] sm:$0xff]  ;;  %v794_v18 = vld [vmem:[#allocation5 + $0x98] sm:$0xff]  ;;  %v785_v21 = vld [vmem:[#allocation5 + $0x50] sm:$0xff]  ;;  %p949_p8 = scmp.lt.s32.totalorder %s947_s9, %s943_s28 }
  0x35   : > { %509 = vmatpush.bf16.msra.mxu2 %v797_v6  ;;  %v803_v15 = vld [vmem:[#allocation5 + $0xe0] sm:$0xff]  ;;  %v802_v19 = vld [vmem:[#allocation5 + $0xd8] sm:$0xff]  ;;  %v793_v22 = vld [vmem:[#allocation5 + $0x90] sm:$0xff]  ;;  %p945_p3 = pnand %p944_p1, %p1082_p13 }
  0x36   : > { %522 = vmatpush.bf16.msra.mxu3 %v805_v7  ;;  %v801_v23 = vld [vmem:[#allocation5 + $0xd0] sm:$0xff]  ;;  %v776_v24 = vld [vmem:[#allocation5 + $0x8] sm:$0xff]  ;;  %v775_v32 = vld [vmem:[#allocation5] sm:$0xff]  ;;  %p950_p7 = por %p949_p8, %p948_p12 }
  0x37   : > { %484 = vmatpush.bf16.msra.mxu0 %v780_v8  ;;  %v784_v25 = vld [vmem:[#allocation5 + $0x48] sm:$0xff]  ;;  %v206_v26 = vld [vmem:[%s1117_s11] sm:$0xff]  ;;  %p946_p5 = pneg %p945_p3 }
  0x38   : > { %497 = vmatpush.bf16.msra.mxu1 %v788_v9  ;;  %v792_v27 = vld [vmem:[#allocation5 + $0x88] sm:$0xff]  ;;  %v278_v30 = vunpack.c.l.b16 %v206_v26  ;;  %v279_v31 = vunpack.c.h.b16 %v206_v26  ;;  %v783_v33 = vld [vmem:[#allocation5 + $0x40] sm:$0xff] }
  0x39   : > { %510 = vmatpush.bf16.msra.mxu2 %v796_v10  ;;  %v800_v28 = vld [vmem:[#allocation5 + $0xc8] sm:$0xff]  ;;  %v791_v36 = vld [vmem:[#allocation5 + $0x80] sm:$0xff]  ;;  %p951_p9 = pnand %p950_p7, %p946_p5 }
  0x3a   : > { %523 = vmatpush.bf16.msra.mxu3 %v804_v11  ;;  %v207_v29 = vld [vmem:[%s1117_s11 + $0x8] sm:$0xff]  ;;  %v799_v37 = vld [vmem:[#allocation5 + $0xc0] sm:$0xff]  ;;  %v282_v38 = vpack.c.b16 %v278_v30, %v278_v30  ;;  %v283_v39 = vpack.c.b16 %v279_v31, %v279_v31 }
  0x3b   : > { %485 = vmatpush.bf16.msra.mxu0 %v779_v12  ;;  %v280_v34 = vunpack.c.l.b16 %v207_v29  ;;  %v281_v35 = vunpack.c.h.b16 %v207_v29  ;;  %v866_v42 = vld [vmem:[%s1168_s2] ss:$0 sm:$0xff] }
  0x3c   : > { %498 = vmatpush.bf16.msra.mxu1 %v787_v13 }
  0x3d   : > { %511 = vmatpush.bf16.msra.mxu2 %v795_v14  ;;  %v284_v40 = vpack.c.b16 %v280_v34, %v280_v34  ;;  %v285_v41 = vpack.c.b16 %v281_v35, %v281_v35 }
  0x3e   : > { %524 = vmatpush.bf16.msra.mxu3 %v803_v15 }
  0x3f   : > { %486 = vmatpush.bf16.msra.mxu0 %v778_v16 }
  0x40   : > { %499 = vmatpush.bf16.msra.mxu1 %v786_v17 }
  0x41   : > { %512 = vmatpush.bf16.msra.mxu2 %v794_v18 }
  0x42   : > { %525 = vmatpush.bf16.msra.mxu3 %v802_v19 }
  0x43   : > { %487 = vmatpush.bf16.msra.mxu0 %v777_v20 }
  0x44   : > { %500 = vmatpush.bf16.msra.mxu1 %v785_v21 }
  0x45   : > { %513 = vmatpush.bf16.msra.mxu2 %v793_v22 }
  0x46   : > { %526 = vmatpush.bf16.msra.mxu3 %v801_v23 }
  0x47   : > { %488 = vmatpush.bf16.msra.mxu0 %v776_v24 }
  0x48   : > { %501 = vmatpush.bf16.msra.mxu1 %v784_v25 }
  0x49   : > { %514 = vmatpush.bf16.msra.mxu2 %v792_v27 }
  0x4a   : > { %527 = vmatpush.bf16.msra.mxu3 %v800_v28 }
  0x4b   : > { %489 = vmatpush.bf16.msra.mxu0 %v775_v32 }
  0x4c   : > { %502 = vmatpush.bf16.msra.mxu1 %v783_v33 }
  0x4d   : > { %515 = vmatpush.bf16.msra.mxu2 %v791_v36 }
  0x4e   : > { %528 = vmatpush.bf16.msra.mxu3 %v799_v37  ;;  %490 = vmatmul.bf16.vlgmr.msra.gmra.mxu0 %v282_v38 }
  0x4f   : > { %503 = vmatmul.bf16.vlgmr.msra.gmra.mxu1 %v283_v39 }
  0x50   : > { %516 = vmatmul.bf16.vlgmr.msra.gmra.mxu2 %v284_v40 }
  0x51   : > { %529 = vmatmul.bf16.vlgmr.msra.gmra.mxu3 %v285_v41 }
  0xcb   : > { %v491_v43 = vpop.f32.mrf.mxu0 }
  0xcc   : > { %v504_v44 = vpop.f32.mrf.mxu1  ;;  %v492_v45 = vadd.f32 %v866_v42, %v491_v43 }
  0xce   : > { %v505_v46 = vadd.f32 %v504_v44, %v492_v45 }
  0xd3   : > { %v517_v47 = vpop.f32.mrf.mxu2  ;;  %v493_v50 = vpop.f32.mrf.mxu0 }
  0xd4   : > { %v530_v48 = vpop.f32.mrf.mxu3  ;;  %v518_v49 = vadd.f32 %v517_v47, %v505_v46  ;;  %v506_v51 = vpop.f32.mrf.mxu1 }
  0xd6   : > { %v531_v52 = vadd.f32 %v530_v48, %v518_v49 }
  0xd8   : > { %534 = vst [vmem:[%s205_s23] sm:$0xff] %v531_v52 }
  0xd9   : > { %954 = shalt.err (!%p951_p9)
}
  0xda   : > { %813 = dma.vmem_to_hbm [thread:$0]  (%p1082_p13), %s549_s24, 128, %s551_s25, %s536_s27  }
  0xdb   : > { %v519_v53 = vpop.f32.mrf.mxu2 }
  0xdc   : > { %v532_v54 = vpop.f32.mrf.mxu3 }
  0xdd PF: > { %s562_s5 = sand.u32 1, %s985_s12   ;;  %p1175_p10 = scmp.ge.s32.totalorder %s997_s15, 2 }
  0xde   : > { %s563_s20 = scalar_lea.sflag [#allocation4], %s562_s5 }
  0xdf   : > { %p824_p11 = pnand %p1175_p10, %p1087_p4 }
  0xe1   : > { %p825_p0 = pneg %p824_p11 }
  0xe3   : > { %980 = dma.done.wait (%p825_p0), %s563_s20, 128  }
  0xe4   : > { %982 = vsyncadd (%p825_p0), %s563_s20, 4294967168  ;;  %p17_p13 = scmp.ge.s32.totalorder %s1062_s26, 4   ;;  %s1176_s12 = smov %s989_s13 }
  0xe5   : > { %s1177_s13 = smov %s993_s14  ;;  %s1178_s14 = smov %s1074_s29 }
  0xe6   : > { %s1179_s15 = smov %s1062_s26  ;;  %19 = sbr.rel (!%p17_p13) target bundleno = 6 (0x6), region = 81 }
  0xeb   :  { %569 = vsyncpa [#allocation3], 1 }
  0xec   :  { %571 = vsyncpa [#allocation3 + $0x1], 1 }
  0xed   :  { %572 = vsyncpa [#allocation6], 1 }
  0xee   :  { %573 = vsyncpa [#allocation4], 1 }
  0xef   :  { %575 = vsyncpa [#allocation4 + $0x1], 1 }

</bundles_post_ra>
